<compile_context>
chip_gen: v6e
topology: v6e:2x2x1
jax: 0.10.0
libtpu: 0.0.40
codegen_flags: <defaults>
</compile_context>

<pallas_src>
from functools import partial

import jax
import jax.numpy as jnp
from jax.experimental import pallas as pl
from jax.experimental.pallas import tpu as pltpu


# ----------------------------------------------------------------------------
# Fused kernel:  out_tile = Q @ (P @ (x_tile @ W)), batched over the tile
# ----------------------------------------------------------------------------
def _conv_kernel(x_ref, q_ref, p_ref, w_ref, o_ref):
    rows, cin = x_ref.shape               # rows = bt * V
    bt, k2, v = p_ref.shape               # (bt, 2K, V)
    cout = w_ref.shape[1]

    # 1) One wide MXU matmul for the whole batch tile (batch folded into rows).
    xw = jnp.dot(x_ref[...], w_ref[...], preferred_element_type=jnp.float32)
    xw3 = xw.reshape(bt, v, cout)          # leading-dim split: layout no-op (V % 8 == 0)

    # 2) Rank-2K spectral filter, batched over the tile: no per-batch python
    #    loop, no per-batch stores, no in-kernel transposes.
    s = jnp.einsum("bkv,bvc->bkc", p_ref[...], xw3,
                   preferred_element_type=jnp.float32)        # [bt, 2K, Cout]
    y = jnp.einsum("bvk,bkc->bvc", q_ref[...], s,
                   preferred_element_type=jnp.float32)        # [bt, V, Cout]

    # 3) Single lane-dense store of the whole tile.
    o_ref[...] = y.reshape(rows, cout)


# ----------------------------------------------------------------------------
# Tile-size / VMEM-budget helpers (per TPU generation)
# ----------------------------------------------------------------------------
def _vmem_limit_bytes():
    try:
        cap = int(pltpu.get_tpu_info().vmem_capacity_bytes)
    except Exception:
        cap = 64 * 1024 * 1024            # conservative (v7x physical VMEM)
    # ~75% of physical, capped: v5e/v6e -> 96 MiB, v7x -> 48 MiB.
    return min(int(0.75 * cap), 100 * 1024 * 1024)


def _pick_batch_tile(B, V, K, Cin, Cout, vmem_limit_bytes):
    k2 = 2 * K
    budget = int(0.6 * vmem_limit_bytes)
    fixed = 4 * 2 * Cin * Cout                        # double-buffered W block
    per_batch = 4 * (2 * V * Cin                      # x block (double-buffered)
                     + 2 * V * Cout                   # out block (double-buffered)
                     + 4 * V * k2                     # Q/P blocks (double-buffered)
                     + V * Cout + k2 * Cout)          # in-kernel f32 intermediates
    bt = max(1, min(B, (budget - fixed) // per_batch))
    bt = min(bt, max(1, 4096 // V))                   # bound per-step slab / unroll
    if B >= 2:
        bt = min(bt, -(-B // 2))                      # >= 2 grid steps: both v7x TCs busy
    return max(1, bt)


# ----------------------------------------------------------------------------
# Wrapper
# ----------------------------------------------------------------------------
@partial(jax.jit, static_argnames=("block_b", "vmem_limit"))
def _forward(x, svecs_l, svecs_r, svals, weight, *, block_b, vmem_limit):
    B, V, Cin = x.shape
    Cout = weight.shape[1]
    K = svals.shape[0]
    k2 = 2 * K
    bt = block_b

    x = x.astype(jnp.float32)
    weight = weight.astype(jnp.float32)
    # Hoisted, layout-only work: fold singular values into the left factors and
    # pre-transpose the right factors; keep the operator in rank-2K form.
    q = jnp.concatenate([svecs_l * svals[None, :],
                         svecs_r * svals[None, :]], axis=1).astype(jnp.float32)   # [V, 2K]
    p = jnp.concatenate([svecs_l, svecs_r], axis=1).T.astype(jnp.float32)         # [2K, V]

    # Pad batch to a tile multiple (padded batches are zero -> zero outputs).
    B_pad = -(-B // bt) * bt
    if B_pad != B:
        x = jnp.pad(x, ((0, B_pad - B), (0, 0), (0, 0)))

    # Fold batch into rows in the wrapper (free metadata reshape in XLA).
    x2 = x.reshape(B_pad * V, Cin)
    # Give the tiny operator factors an explicit tile-batch dim (matches the
    # supported batched-matmul pattern inside the kernel; constant-index block
    # so it is only DMA'd once).
    q3 = jnp.broadcast_to(q[None], (bt, V, k2))
    p3 = jnp.broadcast_to(p[None], (bt, k2, V))

    grid = (B_pad // bt,)
    flops = 2 * B_pad * V * Cout * (Cin + 2 * k2)
    bytes_accessed = 4 * (B_pad * V * (Cin + Cout) + 2 * bt * V * k2 + Cin * Cout)

    out2 = pl.pallas_call(
        _conv_kernel,
        out_shape=jax.ShapeDtypeStruct((B_pad * V, Cout), jnp.float32),
        grid=grid,
        in_specs=[
            pl.BlockSpec((bt * V, Cin), lambda i: (i, 0)),
            pl.BlockSpec((bt, V, k2), lambda i: (0, 0, 0)),
            pl.BlockSpec((bt, k2, V), lambda i: (0, 0, 0)),
            pl.BlockSpec((Cin, Cout), lambda i: (0, 0)),
        ],
        out_specs=pl.BlockSpec((bt * V, Cout), lambda i: (i, 0)),
        compiler_params=pltpu.CompilerParams(
            dimension_semantics=("parallel",),
            vmem_limit_bytes=vmem_limit),
        cost_estimate=pl.CostEstimate(
            flops=flops, transcendentals=0, bytes_accessed=bytes_accessed),
    )(x2, q3, p3, weight)

    return out2.reshape(B_pad, V, Cout)[:B]


def approx_svd_graph_conv(x, svecs_l, svecs_r, svals, weight):
    """x: [B, V, Cin]; svecs_*: [V, K]; svals: [K]; weight: [Cin, Cout]."""
    B, V, Cin = x.shape
    Cout = weight.shape[1]
    K = svals.shape[0]
    vmem_limit = _vmem_limit_bytes()
    bt = _pick_batch_tile(B, V, K, Cin, Cout, vmem_limit)
    return _forward(x, svecs_l, svecs_r, svals, weight,
                    block_b=bt, vmem_limit=vmem_limit)


# ----------------------------------------------------------------------------
# Pure-JAX reference mirroring the PyTorch module exactly
# ----------------------------------------------------------------------------
def ref_forward(x, svecs_l, svecs_r, svals, weight):
    outs = []
    for b in range(x.shape[0]):
        xl = svecs_l.T @ x[b]
        xr = svecs_r.T @ x[b]
        fl = (xl @ weight) * svals[:, None]
        fr = (xr @ weight) * svals[:, None]
        outs.append(svecs_l @ fl + svecs_r @ fr)
    return jnp.stack(outs)


if __name__ == "__main__":
    B, V, Cin, Cout, K = 2, 16, 32, 128, 8   # Cout=128 -> lane-dense output stores

    key = jax.random.PRNGKey(0)
    kx, kl, kr, kw = jax.random.split(key, 4)
    x = jax.random.normal(kx, (B, V, Cin), jnp.float32)
    svecs_l = jax.random.normal(kl, (V, K), jnp.float32) / jnp.sqrt(V)
    svecs_r = jax.random.normal(kr, (V, K), jnp.float32) / jnp.sqrt(V)
    svals = jnp.linspace(2.0, 0.5, K, dtype=jnp.float32)
    bound = float(jnp.sqrt(6.0 / Cin))       # kaiming-uniform style init
    weight = jax.random.uniform(kw, (Cin, Cout), jnp.float32, -bound, bound)

    out = jax.block_until_ready(
        approx_svd_graph_conv(x, svecs_l, svecs_r, svals, weight))
    assert out.shape == (B, V, Cout), out.shape

    ref = jax.block_until_ready(ref_forward(x, svecs_l, svecs_r, svals, weight))
    err = float(jnp.max(jnp.abs(out - ref)))
    assert jnp.allclose(out, ref, rtol=1e-3, atol=1e-3), f"max abs err {err}"

    print("KERNEL_OK")
</pallas_src>

<mosaic_0001>
module attributes {stable_mosaic.version = 11 : i64} {
  func.func @_conv_kernel(%arg0: i32, %arg1: memref<16x32xf32, #tpu.memory_space<vmem>>, %arg2: memref<1x16x16xf32, #tpu.memory_space<vmem>>, %arg3: memref<1x16x16xf32, #tpu.memory_space<vmem>>, %arg4: memref<32x128xf32, #tpu.memory_space<vmem>>, %arg5: memref<16x128xf32, #tpu.memory_space<vmem>>) attributes {dimension_semantics = [#tpu.dimension_semantics<parallel>], iteration_bounds = array<i64: 2>, scalar_prefetch = 0 : i64, scratch_operands = 0 : i64, tpu.core_type = #tpu.core_type<tc>, window_params = [{transform_indices = @transform_0, window_bounds = array<i64: 16, 32>}, {pipeline_mode = #tpu.pipeline_mode<synchronous>, transform_indices = @transform_1, window_bounds = array<i64: 1, 16, 16>}, {pipeline_mode = #tpu.pipeline_mode<synchronous>, transform_indices = @transform_2, window_bounds = array<i64: 1, 16, 16>}, {pipeline_mode = #tpu.pipeline_mode<synchronous>, transform_indices = @transform_3, window_bounds = array<i64: 32, 128>}, {transform_indices = @transform_4, window_bounds = array<i64: 16, 128>}]} {
    %c0 = arith.constant 0 : index
    %c0_0 = arith.constant 0 : index
    %0 = vector.load %arg1[%c0, %c0_0] : memref<16x32xf32, #tpu.memory_space<vmem>>, vector<16x32xf32>
    %c0_1 = arith.constant 0 : index
    %c0_2 = arith.constant 0 : index
    %1 = vector.load %arg4[%c0_1, %c0_2] : memref<32x128xf32, #tpu.memory_space<vmem>>, vector<32x128xf32>
    %cst = arith.constant dense<0.000000e+00> : vector<16x128xf32>
    %2 = tpu.matmul %0, %1, %cst {dimension_numbers = #tpu.dot_dimension_numbers<[1], [0], [0], [1], [0, 0, 1, 1], [], []>} : vector<16x32xf32>, vector<32x128xf32>, vector<16x128xf32> -> vector<16x128xf32>
    %3 = vector.shape_cast %2 : vector<16x128xf32> to vector<1x16x128xf32>
    %c0_3 = arith.constant 0 : index
    %c0_4 = arith.constant 0 : index
    %c0_5 = arith.constant 0 : index
    %4 = vector.load %arg3[%c0_3, %c0_4, %c0_5] : memref<1x16x16xf32, #tpu.memory_space<vmem>>, vector<1x16x16xf32>
    "tpu.trace_start"() <{level = 10 : i32, message = "bkv,bvc->bkc"}> : () -> ()
    %cst_6 = arith.constant dense<0.000000e+00> : vector<1x16x128xf32>
    %5 = tpu.matmul %4, %3, %cst_6 {dimension_numbers = #tpu.dot_dimension_numbers<[2], [1], [1], [2], [0, 0, 0, 1, 1, 2], [0], [0]>} : vector<1x16x16xf32>, vector<1x16x128xf32>, vector<1x16x128xf32> -> vector<1x16x128xf32>
    "tpu.trace_stop"() : () -> ()
    %c0_7 = arith.constant 0 : index
    %c0_8 = arith.constant 0 : index
    %c0_9 = arith.constant 0 : index
    %6 = vector.load %arg2[%c0_7, %c0_8, %c0_9] : memref<1x16x16xf32, #tpu.memory_space<vmem>>, vector<1x16x16xf32>
    "tpu.trace_start"() <{level = 10 : i32, message = "bvk,bkc->bvc"}> : () -> ()
    %cst_10 = arith.constant dense<0.000000e+00> : vector<1x16x128xf32>
    %7 = tpu.matmul %6, %5, %cst_10 {dimension_numbers = #tpu.dot_dimension_numbers<[2], [1], [1], [2], [0, 0, 0, 1, 1, 2], [0], [0]>} : vector<1x16x16xf32>, vector<1x16x128xf32>, vector<1x16x128xf32> -> vector<1x16x128xf32>
    "tpu.trace_stop"() : () -> ()
    %8 = vector.shape_cast %7 : vector<1x16x128xf32> to vector<16x128xf32>
    %c0_11 = arith.constant 0 : index
    %c0_12 = arith.constant 0 : index
    %9 = vector.load %arg5[%c0_11, %c0_12] : memref<16x128xf32, #tpu.memory_space<vmem>>, vector<16x128xf32>
    tpu.vector_store %arg5[%c0_11, %c0_12], %8 {strides = array<i32>} : memref<16x128xf32, #tpu.memory_space<vmem>>, vector<16x128xf32>,
    return
  }
  func.func @transform_0(%arg0: i32) -> (i32, i32) {
    %c0_i32 = arith.constant 0 : i32
    %c0_i32_0 = arith.constant 0 : i32
    return %arg0, %c0_i32 : i32, i32
  }
  func.func @transform_1(%arg0: i32) -> (i32, i32, i32) {
    %c0_i32 = arith.constant 0 : i32
    %c0_i32_0 = arith.constant 0 : i32
    %c0_i32_1 = arith.constant 0 : i32
    %c0_i32_2 = arith.constant 0 : i32
    return %c0_i32, %c0_i32_0, %c0_i32_1 : i32, i32, i32
  }
  func.func @transform_2(%arg0: i32) -> (i32, i32, i32) {
    %c0_i32 = arith.constant 0 : i32
    %c0_i32_0 = arith.constant 0 : i32
    %c0_i32_1 = arith.constant 0 : i32
    %c0_i32_2 = arith.constant 0 : i32
    return %c0_i32, %c0_i32_0, %c0_i32_1 : i32, i32, i32
  }
  func.func @transform_3(%arg0: i32) -> (i32, i32) {
    %c0_i32 = arith.constant 0 : i32
    %c0_i32_0 = arith.constant 0 : i32
    %c0_i32_1 = arith.constant 0 : i32
    return %c0_i32, %c0_i32_0 : i32, i32
  }
  func.func @transform_4(%arg0: i32) -> (i32, i32) {
    %c0_i32 = arith.constant 0 : i32
    %c0_i32_0 = arith.constant 0 : i32
    return %arg0, %c0_i32 : i32, i32
  }
}

</mosaic_0001>

<bundles_post_ra>
// kernel: _forward.1
= control target key start
LH: loop header
LB: loop body
LE: loop exit
PB: predicated region body
PF: predicated region fallthrough
CT: control target
= control target key end

     0   :  { %9 = vsyncpa [#allocation3], 0  ;;  %s850_s0 = inlined_call_operand.vmem [shape: f32[32,32], index: 0, kind: input, shape index: {}]   ;;  %s851_s1 = inlined_call_operand.vmem [shape: f32[1,16,16], index: 1, kind: input, shape index: {}]   ;;  %s852_s2 = inlined_call_operand.vmem [shape: f32[1,16,16], index: 2, kind: input, shape index: {}]   ;;  %s853_s3 = inlined_call_operand.vmem [shape: f32[32,128], index: 3, kind: input, shape index: {}]   ;;  %s854_s4 = inlined_call_operand.hbm [shape: f32[32,128], index: 4, kind: output, shape index: {}]  }
   0x1   :  { %11 = vsyncpa [#allocation3 + $0x1], 0  ;;  %s721_s15 = smov 0   ;;  %s723_s16 = smov 0  }
   0x2   :  { %s725_s17 = smov 0   ;;  %s727_s18 = smov 0  }
   0x3 LB: > { %s742_s19 = sadd.s32 4294967295, %s691_s18   ;;  %s532_s20 = sadd.s32 4294967294, %s691_s18   ;;  %s691_s18 = sphi %s727_s18, %s860_s18   ;;  %s687_s17 = sphi %s725_s17, %s859_s17   ;;  %s683_s16 = sphi %s723_s16, %s858_s16   ;;  %s679_s15 = sphi %s721_s15, %s857_s15  }
   0x4   : > { %s746_s21 = sadd.s32 1, %s691_s18   ;;  %s113_s22 = sadd.s32 1, %s687_s17 }
   0x5   : > { %s110_s23 = ssub.s32 %s691_s18, %s746_s21  ;;  %p123_p0 = scmp.ne.s32.totalorder %s687_s17, %s683_s16 }
   0x6   : > { %p111_p1 = scmp.eq.s32.totalorder %s110_s23, 0  ;;  %p124_p2 = scmp.eq.s32.totalorder %s742_s19, 1 }
   0x7   : > { %p129_p3 = scmp.ne.s32.totalorder %s683_s16, %s679_s15  ;;  %p130_p4 = scmp.eq.s32.totalorder %s532_s20, 1 }
   0x8   : > { %s757_s24 = scalar_select %p111_p1, %s687_s17, %s113_s22  }
   0x9   : > { %p759_p5 = por %p124_p2, %p123_p0  ;;  %p763_p6 = por %p130_p4, %p129_p3 }
   0xa   : > { %p535_p7 = scmp.ge.s32.totalorder %s691_s18, 1  ;;  %p166_p8 = scmp.lt.s32.totalorder %s691_s18, 3 }
   0xc   : > { %p167_p9 = pnand %p535_p7, %p166_p8 }
   0xd   : > { %s537_s5 = sshll.u32 (!%p167_p9), %s742_s19, 1  ;;  %s550_s9 = sshll.u32 (!%p167_p9), %s742_s19, 8 }
   0xe   : > { %170 = sbr.rel (%p167_p9) target bundleno = 631 (0x277), region = 36  ;;  %p193_p10 = scmp.lt.s32.totalorder (!%p167_p9), %s537_s5, 3 }
   0xf   : > { %s808_s12 = scalar_lea.hbm (!%p167_p9), %s854_s4, %s550_s9  ;;  %s693_s19 = smov (!%p167_p9), [#allocation2]  }
  0x10   : > { %s635_s20 = sshll.u32 (!%p167_p9), %s693_s19, 4  ;;  %s636_s20 = int_to_ptr.vmem [resolvable:$false] %s635_s20 }
  0x11   : > { %s637_s22 = scalar_lea.vmem (!%p167_p9), %s636_s20, 512 }
  0x13   : > { %v204_v0 = vld [vmem:[%s853_s3 + $0x18] sm:$0xff]  ;;  %v203_v1 = vld [vmem:[%s853_s3 + $0x10] sm:$0xff]  ;;  %v202_v2 = vld [vmem:[%s853_s3 + $0x8] sm:$0xff]  ;;  %s862_s5 = smov (!%p193_p10, %s537_s5), 3  ;;  %vm205_vm0 = vcmask 261120   ;;  %vm289_vm1 = vcmask 130048  }
  0x14   : > { %565 = vmatprep.subr.mxu0 %v204_v0  ;;  %v201_v3 = vld [vmem:[%s853_s3] sm:$0xff]  ;;  %s538_s10 = sshll.u32 %s862_s5, 3  ;;  %v288_v9 = vld [vmem:[%s852_s2 + $0x8] sm:$0xff]  ;;  %s189_s5 = sand.u32 1, %s683_s16  }
  0x15   : > { %566 = vmatpush3.msra.mxu0 %v204_v0  ;;  %s196_s13 = scalar_lea.vmem %s850_s0, %s538_s10  ;;  %v287_v6 = vld [vmem:[%s852_s2] sm:$0xff]  ;;  %v372_v13 = vld [vmem:[%s851_s1 + $0x8] sm:$0xff]  ;;  %s536_s6 = sshll.u32 %s189_s5, 4 }
  0x16   : > { %567 = vmatprep.subr.mxu0 %v203_v1  ;;  %v199_v4 = vld [vmem:[%s196_s13] sm:$0xff]  ;;  %v200_v5 = vld [vmem:[%s196_s13 + $0x8] sm:$0xff]  ;;  %580 = vmatprep.mubr.msk.f32.mxu1 %vm289_vm1, %v287_v6  ;;  %s191_s7 = scalar_lea.vmem [#allocation2], %s536_s6  ;;  %s810_s13 = scalar_lea.sflag [#allocation3], %s189_s5 }
  0x17   : > { %568 = vmatpush3.msra.mxu0 %v203_v1  ;;  %573 = vmatprep.mubr.msk.f32.mxu0 %vm205_vm0, %v199_v4  ;;  %v371_v10 = vld [vmem:[%s851_s1] sm:$0xff]  ;;  %s470_s8 = sshll.u32 %s191_s7, 4  ;;  %s803_s8 = int_to_ptr.vmem [resolvable:$true] %s470_s8 }
  0x18   : > { %569 = vmatprep.subr.mxu0 %v202_v2  ;;  %s631_s14 = scalar_lea.vmem %s803_s8, 256  ;;  %p638_p0 = scmp.lt.s32.totalorder %s803_s8, %s636_s20 }
  0x19   : > { %570 = vmatpush3.msra.mxu0 %v202_v2  ;;  %p632_p11 = scmp.ne.s32.totalorder %s803_s8, %s631_s14  ;;  %p639_p1 = scmp.lt.s32.totalorder %s637_s22, %s631_s14 }
  0x1a   : > { %571 = vmatprep.subr.mxu0 %v201_v3 }
  0x1b   : > { %572 = vmatpush3.msra.mxu0 %v201_v3  ;;  %p633_p12 = pnand %p632_p11, %p759_p5  ;;  %p640_p2 = por %p639_p1, %p638_p0 }
  0x1c   : > { %574 = vmatmul.mubr.msk.f32.vlgmr.msra.gmra.mxu0 %vm205_vm0, %v200_v5 }
  0x1d   : > { %p634_p13 = pneg %p633_p12 }
  0x1f   : > { %p641_p3 = pnand %p640_p2, %p634_p13 }
  0xdc   : > { %v575_v7 = vpop.f32.mrf.mxu0 }
  0xdd   : > { %576 = vmatprep.subr.mxu1 %v575_v7 }
  0xde   : > { %v278_v8 = vpop.f32.mrf.mxu0  ;;  %577 = vmatpush3.msra.mxu1 %v575_v7 }
  0xdf   : > { %578 = vmatprep.subr.mxu1 %v278_v8 }
  0xe0   : > { %579 = vmatpush3.msra.mxu1 %v278_v8 }
  0xe1   : > { %581 = vmatmul.mubr.msk.f32.vlgmr.msra.gmra.mxu1 %vm289_vm1, %v288_v9 }
  0xe2   : > { %587 = vmatprep.mubr.msk.f32.mxu1 %vm289_vm1, %v371_v10 }
 0x1a1   : > { %v582_v11 = vpop.f32.mrf.mxu1 }
 0x1a2   : > { %583 = vmatprep.subr.mxu1 %v582_v11 }
 0x1a3   : > { %v362_v12 = vpop.f32.mrf.mxu1  ;;  %584 = vmatpush3.msra.mxu1 %v582_v11 }
 0x1a4   : > { %585 = vmatprep.subr.mxu1 %v362_v12 }
 0x1a5   : > { %586 = vmatpush3.msra.mxu1 %v362_v12 }
 0x1a6   : > { %588 = vmatmul.mubr.msk.f32.vlgmr.msra.gmra.mxu1 %vm289_vm1, %v372_v13 }
 0x266   : > { %v589_v14 = vpop.f32.mrf.mxu1 }
 0x267   : > { %455 = vst [vmem:[%s191_s7 + $0x8] sm:$0xff] %v589_v14 }
 0x268   : > { %v445_v15 = vpop.f32.mrf.mxu1 }
 0x269   : > { %454 = vst [vmem:[%s191_s7] sm:$0xff] %v445_v15 }
 0x26a   : > { %644 = shalt.err (!%p641_p3)
}
 0x26b   : > { %s645_s23 = scalar_lea.hbm %s808_s12, 256  ;;  %s649_s29 = scalar_lea.hbm %s854_s4, 512 }
 0x26c   : > { %p646_p4 = scmp.ne.s32.totalorder %s808_s12, %s645_s23  ;;  %p650_p9 = scmp.lt.s32.totalorder %s808_s12, %s854_s4 }
 0x26d   : > { %p651_p10 = scmp.lt.s32.totalorder %s649_s29, %s645_s23 }
 0x26e   : > { %p647_p7 = pnand %p646_p4, %p759_p5 }
 0x26f   : > { %p652_p11 = por %p651_p10, %p650_p9 }
 0x270   : > { %p648_p8 = pneg %p647_p7 }
 0x272   : > { %p653_p12 = pnand %p652_p11, %p648_p8 }
 0x274   : > { %656 = shalt.err (!%p653_p12)
}
 0x275   : > { %s694_s6 = smov 128   ;;  %s695_s7 = smov 8  }
 0x276   : > { %590 = dma.vmem_to_hbm [thread:$0]  (%p759_p5), %s803_s8, 256, %s808_s12, %s810_s13, %s694_s6, %s694_s6, %s695_s7  }
 0x277 PF: > { %p596_p13 = scmp.ge.s32.totalorder %s691_s18, 2  ;;  %s485_s9 = sand.u32 1, %s679_s15  }
 0x278   : > { %s486_s10 = scalar_lea.sflag [#allocation3], %s485_s9 }
 0x279   : > { %p593_p0 = pnand %p596_p13, %p763_p6 }
 0x27b   : > { %p594_p1 = pneg %p593_p0 }
 0x27d   : > { %674 = dma.done.wait (%p594_p1), %s486_s10, 256  }
 0x27e   : > { %676 = vsyncadd (%p594_p1), %s486_s10, 4294967040  ;;  %p14_p2 = scmp.ge.s32.totalorder %s746_s21, 4   ;;  %s857_s15 = smov %s683_s16 }
 0x27f   : > { %s858_s16 = smov %s687_s17  ;;  %s859_s17 = smov %s757_s24 }
 0x280   : > { %s860_s18 = smov %s746_s21  ;;  %16 = sbr.rel (!%p14_p2) target bundleno = 3 (0x3), region = 71 }
 0x285   :  { %491 = vsyncpa [#allocation3], 1 }
 0x286   :  { %493 = vsyncpa [#allocation3 + $0x1], 1 }

</bundles_post_ra>
